<compile_context>
chip_gen: v7x
topology: tpu7x:2x2x1
jax: 0.10.0
libtpu: 0.0.40
codegen_flags: <defaults>
</compile_context>

<pallas_src>
import functools

import jax
import jax.numpy as jnp
from jax.experimental import pallas as pl
from jax.experimental.pallas import tpu as pltpu


def _round_up(x, m):
    return ((x + m - 1) // m) * m


def _cdiv(a, b):
    return (a + b - 1) // b


def _choose_batch_tiling(batch):
    """Pick (tile_b, padded_batch) for the batch grid axis.

    Large tiles amortize the ~0.35us/grid-step overhead; >=2 tiles for B >= 512
    keep both v7x TensorCores busy; MXU-aligned tile sizes are preferred only
    when they don't inflate batch padding.
    """
    cap = 1024
    n_tiles = _cdiv(batch, cap)
    if batch >= 512:
        n_tiles = max(n_tiles, 2)          # v7x: give both TCs a grid step
    base = _cdiv(batch, n_tiles)
    tile_b = _round_up(base, 8)
    for gran in (256, 128, 8):             # prefer MXU M granularity if cheap
        cand = _round_up(base, gran)
        if n_tiles * cand <= _round_up(batch, 8) + batch // 8:
            tile_b = cand
            break
    return tile_b, n_tiles * tile_b


def _actor_kernel(ma_ref, state_ref, w_ref, b_ref, out_ref, *, h1p, h2p, ap):
    """One batch tile of the fused 3-layer MLP.

    ma_ref:    (1,)             f32  SMEM   max_action scalar
    state_ref: (TILE_B, S)      f32  VMEM   state rows (unpadded feature dim)
    w_ref:     (3, RMAX, CMAX)  bf16 VMEM   packed, zero-padded weights (in,out)
    b_ref:     (3, CMAX)        f32  VMEM   packed, zero-padded biases
    out_ref:   (TILE_B, A)      f32  VMEM   real-width (masked-store) output
    """
    max_action = ma_ref[0]
    sdim = state_ref.shape[1]
    adim = out_ref.shape[1]

    # Layer 1: Linear + ReLU (bf16 MXU inputs, f32 accumulate; elementwise f32).
    x = state_ref[...].astype(jnp.bfloat16)                          # (TB, S)
    a = jnp.dot(x, w_ref[0, :sdim, :h1p],
                preferred_element_type=jnp.float32)                   # (TB, h1p)
    a = jnp.maximum(a + b_ref[0:1, :h1p], 0.0)                        # pads stay 0

    # Layer 2: Linear + ReLU.
    a = jnp.dot(a.astype(jnp.bfloat16), w_ref[1, :h1p, :h2p],
                preferred_element_type=jnp.float32)                   # (TB, h2p)
    a = jnp.maximum(a + b_ref[1:2, :h2p], 0.0)

    # Layer 3: lane-aligned (h2p, ap) matmul, then keep only the real action
    # columns for bias + tanh (EUP) + scale and the narrow masked store.
    a = jnp.dot(a.astype(jnp.bfloat16), w_ref[2, :h2p, :ap],
                preferred_element_type=jnp.float32)                   # (TB, ap)
    a = a[:, :adim] + b_ref[2:3, :adim]                               # (TB, A)
    out_ref[...] = (max_action * jnp.tanh(a)).astype(out_ref.dtype)


def pack_params(params, state_dim, neurons, action_dim):
    """Pack the 3 (W, b) pairs into one bf16 weight buffer + one f32 bias buffer.

    Weights are stored (in_features, out_features); rows padded to a multiple of
    8 (sublanes), cols to a multiple of 128 (lanes); pads are zero.
    """
    sp = _round_up(max(state_dim, 8), 8)
    h1p = _round_up(neurons[0], 128)
    h2p = _round_up(neurons[1], 128)
    ap = _round_up(action_dim, 128)
    rmax = max(sp, h1p, h2p)
    cmax = max(h1p, h2p, ap)
    # NOTE: max-packed (3, rmax, cmax) layout wastes VMEM if layer sizes diverge
    # a lot; fine at these sizes, revisit for big/unequal hidden dims on v7x.

    w_all = jnp.zeros((3, rmax, cmax), jnp.bfloat16)
    b_all = jnp.zeros((3, cmax), jnp.float32)
    for i in range(3):
        w = params[f"w{i+1}"].astype(jnp.bfloat16)
        bi = params[f"b{i+1}"].reshape(-1).astype(jnp.float32)
        w_all = w_all.at[i, :w.shape[0], :w.shape[1]].set(w)
        b_all = b_all.at[i, :bi.shape[0]].set(bi)
    dims = dict(h1p=h1p, h2p=h2p, ap=ap)
    return w_all, b_all, dims


def delayed_actor_forward(state, w_all, b_all, max_action, dims, action_dim):
    """state: (B, state_dim) f32 -> (B, action_dim) f32."""
    B, S = state.shape
    tile_b, b_pad = _choose_batch_tiling(B)

    # Only pad the batch dim, and only when the tiling doesn't divide B.
    state_in = state
    if b_pad != B:
        state_in = jnp.zeros((b_pad, S), state.dtype).at[:B].set(state)

    ma = jnp.asarray(max_action, jnp.float32).reshape(1)   # SMEM scalar

    kernel = functools.partial(_actor_kernel, **dims)
    out = pl.pallas_call(
        kernel,
        out_shape=jax.ShapeDtypeStruct((b_pad, action_dim), jnp.float32),
        grid=(b_pad // tile_b,),
        in_specs=[
            # max_action: SMEM scalar, read on the scalar unit.
            pl.BlockSpec(memory_space=pltpu.MemorySpace.SMEM),
            # state: tiled over the batch grid axis; last block dim == full dim.
            pl.BlockSpec((tile_b, S), lambda i: (i, 0)),
            # packed weights / biases: constant index_map -> resident in VMEM.
            pl.BlockSpec(w_all.shape, lambda i: (0, 0, 0)),
            pl.BlockSpec(b_all.shape, lambda i: (0, 0)),
        ],
        # Real-width output block (last dim == full array dim): masked vst of
        # action_dim lanes instead of a 128-wide padded writeback + XLA slice.
        out_specs=pl.BlockSpec((tile_b, action_dim), lambda i: (i, 0)),
        compiler_params=pltpu.CompilerParams(
            dimension_semantics=("parallel",)),   # batch axis shards across TCs
    )(ma, state_in, w_all, b_all)

    return out if b_pad == B else out[:B]


def init_params(key, state_dim, action_dim, neurons=(64, 48)):
    """PyTorch nn.Linear default init: U(-1/sqrt(fan_in), 1/sqrt(fan_in)).
    Weights stored (in, out) (transpose of PyTorch layout)."""
    dims = [state_dim, neurons[0], neurons[1], action_dim]
    params = {}
    for i in range(3):
        fan_in, fan_out = dims[i], dims[i + 1]
        key, kw, kb = jax.random.split(key, 3)
        bound = 1.0 / jnp.sqrt(fan_in)
        params[f"w{i+1}"] = jax.random.uniform(
            kw, (fan_in, fan_out), jnp.float32, -bound, bound)
        params[f"b{i+1}"] = jax.random.uniform(
            kb, (1, fan_out), jnp.float32, -bound, bound)
    return params


def _ref_forward_bf16(state, params, max_action):
    """Pure-JAX reference with the same bf16-weight / f32-accumulate recipe."""
    a = state
    for i in range(1, 4):
        w = params[f"w{i}"].astype(jnp.bfloat16)
        b = params[f"b{i}"]
        a = jnp.dot(a.astype(jnp.bfloat16), w,
                    preferred_element_type=jnp.float32) + b
        if i < 3:
            a = jnp.maximum(a, 0.0)
    return max_action * jnp.tanh(a)


def _ref_forward_f32(state, params, max_action):
    a = jnp.maximum(state @ params["w1"] + params["b1"], 0.0)
    a = jnp.maximum(a @ params["w2"] + params["b2"], 0.0)
    return max_action * jnp.tanh(a @ params["w3"] + params["b3"])


if __name__ == "__main__":
    key = jax.random.PRNGKey(0)

    batch = 8
    state_dim = 32
    action_dim = 6
    neurons = (64, 48)
    max_action = 2.0

    key, kp, ks = jax.random.split(key, 3)
    params = init_params(kp, state_dim, action_dim, neurons)
    state = jax.random.normal(ks, (batch, state_dim), jnp.float32)

    w_all, b_all, dims = pack_params(params, state_dim, neurons, action_dim)

    out = delayed_actor_forward(state, w_all, b_all, max_action, dims, action_dim)
    out = jax.block_until_ready(out)

    # Correctness: tight vs a reference using the same bf16-weight recipe,
    # loose vs the full-f32 reference, plus the tanh clamp bound.
    ref_bf16 = _ref_forward_bf16(state, params, max_action)
    ref_f32 = _ref_forward_f32(state, params, max_action)
    assert out.shape == (batch, action_dim)
    assert jnp.allclose(out, ref_bf16, atol=1e-3, rtol=1e-3)
    assert jnp.allclose(out, ref_f32, atol=5e-2, rtol=5e-2)
    assert bool(jnp.all(jnp.abs(out) <= max_action + 1e-5))

    print("KERNEL_OK")
</pallas_src>

<mosaic_0001>
module attributes {stable_mosaic.version = 11 : i64} {
  func.func @_actor_kernel(%arg0: i32, %arg1: memref<1xf32, #tpu.memory_space<smem>>, %arg2: memref<8x32xf32, #tpu.memory_space<vmem>>, %arg3: memref<3x128x128xbf16, #tpu.memory_space<vmem>>, %arg4: memref<3x128xf32, #tpu.memory_space<vmem>>, %arg5: memref<8x6xf32, #tpu.memory_space<vmem>>) attributes {dimension_semantics = [#tpu.dimension_semantics<parallel>], iteration_bounds = array<i64: 1>, scalar_prefetch = 0 : i64, scratch_operands = 0 : i64, tpu.core_type = #tpu.core_type<tc>, window_params = [{transform_indices = @transform_0, window_bounds = array<i64: 1>}, {transform_indices = @transform_1, window_bounds = array<i64: 8, 32>}, {pipeline_mode = #tpu.pipeline_mode<synchronous>, transform_indices = @transform_2, window_bounds = array<i64: 3, 128, 128>}, {pipeline_mode = #tpu.pipeline_mode<synchronous>, transform_indices = @transform_3, window_bounds = array<i64: 3, 128>}, {transform_indices = @transform_4, window_bounds = array<i64: 8, 6>}]} {
    %c0 = arith.constant 0 : index
    %0 = memref.load %arg1[%c0] : memref<1xf32, #tpu.memory_space<smem>>
    %c0_0 = arith.constant 0 : index
    %c0_1 = arith.constant 0 : index
    %1 = vector.load %arg2[%c0_0, %c0_1] : memref<8x32xf32, #tpu.memory_space<vmem>>, vector<8x32xf32>
    %2 = arith.truncf %1 : vector<8x32xf32> to vector<8x32xbf16>
    %c0_2 = arith.constant 0 : index
    %c0_3 = arith.constant 0 : index
    %c0_4 = arith.constant 0 : index
    %3 = vector.load %arg3[%c0_2, %c0_3, %c0_4] : memref<3x128x128xbf16, #tpu.memory_space<vmem>>, vector<1x32x128xbf16>
    %4 = vector.shape_cast %3 : vector<1x32x128xbf16> to vector<32x128xbf16>
    %cst = arith.constant dense<0.000000e+00> : vector<8x128xf32>
    %5 = tpu.matmul %2, %4, %cst {dimension_numbers = #tpu.dot_dimension_numbers<[1], [0], [0], [1], [0, 0, 1, 1], [], []>} : vector<8x32xbf16>, vector<32x128xbf16>, vector<8x128xf32> -> vector<8x128xf32>
    %c0_5 = arith.constant 0 : index
    %c0_6 = arith.constant 0 : index
    %6 = vector.load %arg4[%c0_5, %c0_6] : memref<3x128xf32, #tpu.memory_space<vmem>>, vector<1x128xf32>
    %7 = vector.broadcast %6 : vector<1x128xf32> to vector<8x128xf32>
    %8 = arith.addf %5, %7 : vector<8x128xf32>
    %cst_7 = arith.constant 0.000000e+00 : f32
    %9 = vector.broadcast %cst_7 : f32 to vector<8x128xf32>
    %10 = arith.maximumf %8, %9 : vector<8x128xf32>
    %11 = arith.truncf %10 : vector<8x128xf32> to vector<8x128xbf16>
    %c1 = arith.constant 1 : index
    %c0_8 = arith.constant 0 : index
    %c0_9 = arith.constant 0 : index
    %12 = vector.load %arg3[%c1, %c0_8, %c0_9] : memref<3x128x128xbf16, #tpu.memory_space<vmem>>, vector<1x128x128xbf16>
    %13 = vector.shape_cast %12 : vector<1x128x128xbf16> to vector<128x128xbf16>
    %cst_10 = arith.constant dense<0.000000e+00> : vector<8x128xf32>
    %14 = tpu.matmul %11, %13, %cst_10 {dimension_numbers = #tpu.dot_dimension_numbers<[1], [0], [0], [1], [0, 0, 1, 1], [], []>} : vector<8x128xbf16>, vector<128x128xbf16>, vector<8x128xf32> -> vector<8x128xf32>
    %c1_11 = arith.constant 1 : index
    %c0_12 = arith.constant 0 : index
    %15 = vector.load %arg4[%c1_11, %c0_12] : memref<3x128xf32, #tpu.memory_space<vmem>>, vector<1x128xf32>
    %16 = vector.broadcast %15 : vector<1x128xf32> to vector<8x128xf32>
    %17 = arith.addf %14, %16 : vector<8x128xf32>
    %cst_13 = arith.constant 0.000000e+00 : f32
    %18 = vector.broadcast %cst_13 : f32 to vector<8x128xf32>
    %19 = arith.maximumf %17, %18 : vector<8x128xf32>
    %20 = arith.truncf %19 : vector<8x128xf32> to vector<8x128xbf16>
    %c2 = arith.constant 2 : index
    %c0_14 = arith.constant 0 : index
    %c0_15 = arith.constant 0 : index
    %21 = vector.load %arg3[%c2, %c0_14, %c0_15] : memref<3x128x128xbf16, #tpu.memory_space<vmem>>, vector<1x128x128xbf16>
    %22 = vector.shape_cast %21 : vector<1x128x128xbf16> to vector<128x128xbf16>
    %cst_16 = arith.constant dense<0.000000e+00> : vector<8x128xf32>
    %23 = tpu.matmul %20, %22, %cst_16 {dimension_numbers = #tpu.dot_dimension_numbers<[1], [0], [0], [1], [0, 0, 1, 1], [], []>} : vector<8x128xbf16>, vector<128x128xbf16>, vector<8x128xf32> -> vector<8x128xf32>
    %24 = vector.extract_strided_slice %23 {offsets = [0, 0], sizes = [8, 6], strides = [1, 1]} : vector<8x128xf32> to vector<8x6xf32>
    %c2_17 = arith.constant 2 : index
    %c0_18 = arith.constant 0 : index
    %25 = vector.load %arg4[%c2_17, %c0_18] : memref<3x128xf32, #tpu.memory_space<vmem>>, vector<1x6xf32>
    %26 = vector.broadcast %25 : vector<1x6xf32> to vector<8x6xf32>
    %27 = arith.addf %24, %26 : vector<8x6xf32>
    %28 = math.tanh %27 : vector<8x6xf32>
    %29 = vector.broadcast %0 : f32 to vector<8x6xf32>
    %30 = arith.mulf %29, %28 : vector<8x6xf32>
    %c0_19 = arith.constant 0 : index
    %c0_20 = arith.constant 0 : index
    %31 = vector.load %arg5[%c0_19, %c0_20] : memref<8x6xf32, #tpu.memory_space<vmem>>, vector<8x6xf32>
    tpu.vector_store %arg5[%c0_19, %c0_20], %30 {strides = array<i32>} : memref<8x6xf32, #tpu.memory_space<vmem>>, vector<8x6xf32>,
    return
  }
  func.func @transform_0(%arg0: i32) -> i32 {
    %c0_i32 = arith.constant 0 : i32
    %c0_i32_0 = arith.constant 0 : i32
    return %c0_i32 : i32
  }
  func.func @transform_1(%arg0: i32) -> (i32, i32) {
    %c0_i32 = arith.constant 0 : i32
    %c0_i32_0 = arith.constant 0 : i32
    return %arg0, %c0_i32 : i32, i32
  }
  func.func @transform_2(%arg0: i32) -> (i32, i32, i32) {
    %c0_i32 = arith.constant 0 : i32
    %c0_i32_0 = arith.constant 0 : i32
    %c0_i32_1 = arith.constant 0 : i32
    %c0_i32_2 = arith.constant 0 : i32
    return %c0_i32, %c0_i32_0, %c0_i32_1 : i32, i32, i32
  }
  func.func @transform_3(%arg0: i32) -> (i32, i32) {
    %c0_i32 = arith.constant 0 : i32
    %c0_i32_0 = arith.constant 0 : i32
    %c0_i32_1 = arith.constant 0 : i32
    return %c0_i32, %c0_i32_0 : i32, i32
  }
  func.func @transform_4(%arg0: i32) -> (i32, i32) {
    %c0_i32 = arith.constant 0 : i32
    %c0_i32_0 = arith.constant 0 : i32
    return %arg0, %c0_i32 : i32, i32
  }
}

</mosaic_0001>

<bundles_post_ra>
// kernel: tpu_custom_call.1
= control target key start
LH: loop header
LB: loop body
LE: loop exit
PB: predicated region body
PF: predicated region fallthrough
CT: control target
= control target key end

     0   :  { %10 = vsyncpa [#allocation4], 0  ;;  %s661_s0 = inlined_call_operand.<no memory space> [shape: f32[1], index: 0, kind: input, shape index: {}]   ;;  %s662_s1 = inlined_call_operand.hbm [shape: f32[8,32], index: 1, kind: input, shape index: {}]   ;;  %s663_s2 = inlined_call_operand.hbm [shape: bf16[3,128,128], index: 2, kind: input, shape index: {}]   ;;  %s664_s3 = inlined_call_operand.vmem [shape: f32[3,128], index: 3, kind: input, shape index: {}]   ;;  %s665_s4 = inlined_call_operand.hbm [shape: f32[8,6], index: 4, kind: output, shape index: {}]  }
   0x1   :  { %11 = vsyncpa [#allocation7], 0 }
   0x2   :  { %12 = vsyncpa [#allocation5], 0  ;;  %s550_s15 = smov [#allocation3]   ;;  %s551_s17 = smov [#allocation6]  }
   0x3   :  { %s21_s16 = sshll.u32 %s550_s15, 4  ;;  %s30_s18 = sshll.u32 %s551_s17, 4  ;;  %s22_s16 = int_to_ptr.vmem [resolvable:$true] %s21_s16  ;;  %s582_s18 = int_to_ptr.vmem [resolvable:$true] %s30_s18 }
   0x4   :  { %s478_s21 = scalar_lea.hbm %s662_s1, 128 }
   0x5   :  { %p479_p0 = scmp.ne.s32.totalorder %s662_s1, %s478_s21  ;;  %p482_p1 = scmp.lt.u32.totalorder %s478_s21, %s662_s1 }
   0x7   :  { %p484_p2 = pnand %p482_p1, %p479_p0 }
   0x9   :  { %487 = shalt.err (!%p484_p2)
}
   0xa   :  { %s488_s26 = scalar_lea.vmem %s22_s16, 128  ;;  %p493_p4 = scmp.lt.s32.totalorder %s22_s16, %s22_s16 }
   0xb   :  { %p489_p3 = scmp.ne.s32.totalorder %s22_s16, %s488_s26  ;;  %p494_p5 = scmp.lt.s32.totalorder %s488_s26, %s488_s26 }
   0xd   :  { %p495_p6 = por %p494_p5, %p493_p4 }
   0xf   :  { %p496_p7 = pnand %p495_p6, %p489_p3 }
  0x11   :  { %499 = shalt.err (!%p496_p7)
}
  0x12   :  { %24 = dma.hbm_to_vmem [thread:$0]  %s662_s1, 128, %s22_s16, [#allocation4]  }
  0x13   :  { %s500_s5 = scalar_lea.hbm %s663_s2, 3072 }
  0x14   :  { %p501_p8 = scmp.ne.s32.totalorder %s663_s2, %s500_s5  ;;  %p504_p9 = scmp.lt.u32.totalorder %s500_s5, %s663_s2 }
  0x16   :  { %p506_p10 = pnand %p504_p9, %p501_p8 }
  0x18   :  { %509 = shalt.err (!%p506_p10)
}
  0x19   :  { %s510_s10 = scalar_lea.vmem %s582_s18, 3072  ;;  %p515_p12 = scmp.lt.s32.totalorder %s582_s18, %s582_s18 }
  0x1a   :  { %p511_p11 = scmp.ne.s32.totalorder %s582_s18, %s510_s10  ;;  %p516_p13 = scmp.lt.s32.totalorder %s510_s10, %s510_s10 }
  0x1c   :  { %p517_p0 = por %p516_p13, %p515_p12 }
  0x1e   :  { %p518_p1 = pnand %p517_p0, %p511_p11 }
  0x20   :  { %521 = shalt.err (!%p518_p1)
}
  0x21   :  { %s552_s1 = smov 64   ;;  %s553_s11 = smov 4  }
  0x22   :  { %36 = dma.hbm_to_vmem [thread:$0]  %s663_s2, 3072, %s582_s18, [#allocation7], %s552_s1, %s552_s1, %s553_s11  }
  0x23   :  { %544 = dma.done.wait [#allocation4], 128  }
  0x24   :  { %545 = vsyncadd [#allocation4], 4294967168 }
  0x25   :  { %546 = dma.done.wait [#allocation7], 3072  }
  0x26   :  { %547 = vsyncadd [#allocation7], 4294964224  ;;  %v554_v0 = vmov 0.0   ;;  %vm555_vm0 = vmmov 0   ;;  %v458_v1 = vld [vmem:[#allocation6] sm:$0xff]   ;;  %v459_v2 = vld [vmem:[#allocation6 + $0x8] sm:$0xff]   ;;  %v340_v43 = vstv %s661_s0 }
  0x27   :  { %403 = vmatprep.subr.bf16.mxu0 %v554_v0  ;;  %407 = vmatprep.mubr.msk.bf16.mxu0 %vm555_vm0, %v554_v0  ;;  %v47_v3 = vld [vmem:[#allocation3] sm:$0xff]  ;;  %v460_v4 = vld [vmem:[#allocation6 + $0x40] sm:$0xff]   ;;  %v461_v6 = vld [vmem:[#allocation6 + $0x48] sm:$0xff]   ;;  %vm70_vm1 = vcmask 261120   ;;  %s556_s21 = smov [#allocation8]   ;;  %vm342_vm2 = vcmask 48128  }
  0x28   :  { %411 = vmatprep.subr.bf16.mxu1 %v554_v0  ;;  %427 = vmatprep.mubr.msk.bf16.mxu1 %vm555_vm0, %v554_v0  ;;  %v48_v5 = vpack.c.bf16 %v47_v3, %v47_v3  ;;  %v462_v7 = vld [vmem:[#allocation6 + $0x50] sm:$0xff]   ;;  %v463_v8 = vld [vmem:[#allocation6 + $0x58] sm:$0xff]   ;;  %v464_v9 = vld [vmem:[#allocation6 + $0x60] sm:$0xff]   ;;  %s350_s22 = sshll.u32 %s556_s21, 4  ;;  %s351_s22 = int_to_ptr.vmem [resolvable:$true] %s350_s22 }
  0x29   :  { %404 = vmatpush3.bf16.msra.mxu0 %v458_v1  ;;  %412 = vmatpush3.bf16.msra.mxu1 %v460_v4  ;;  %v465_v10 = vld [vmem:[#allocation6 + $0x68] sm:$0xff]   ;;  %v466_v11 = vld [vmem:[#allocation6 + $0x70] sm:$0xff]   ;;  %v467_v12 = vld [vmem:[#allocation6 + $0x78] sm:$0xff]   ;;  %s522_s23 = scalar_lea.vmem %s351_s22, 128  ;;  %p527_p3 = scmp.lt.s32.totalorder %s351_s22, %s351_s22 }
  0x2a   :  { %405 = vmatprep.subr.bf16.mxu0 %v554_v0  ;;  %413 = vmatprep.subr.bf16.mxu1 %v554_v0  ;;  %v468_v13 = vld [vmem:[#allocation6 + $0x80] sm:$0xff]   ;;  %v469_v14 = vld [vmem:[#allocation6 + $0x88] sm:$0xff]   ;;  %v470_v15 = vld [vmem:[#allocation6 + $0x90] sm:$0xff]   ;;  %p523_p2 = scmp.ne.s32.totalorder %s351_s22, %s522_s23  ;;  %p528_p4 = scmp.lt.s32.totalorder %s522_s23, %s522_s23 }
  0x2b   :  { %v471_v16 = vld [vmem:[#allocation6 + $0x98] sm:$0xff]   ;;  %v472_v17 = vld [vmem:[#allocation6 + $0xa0] sm:$0xff]   ;;  %v473_v18 = vld [vmem:[#allocation6 + $0xa8] sm:$0xff]  }
  0x2c   :  { %v360_v19 = vld [vmem:[%s664_s3] ss:$0 sm:$0xff]  ;;  %v474_v27 = vld [vmem:[#allocation6 + $0xb0] sm:$0xff]   ;;  %v364_v29 = vld [vmem:[%s664_s3 + $0x1] ss:$0 sm:$0xff]  ;;  %p529_p5 = por %p528_p4, %p527_p3 }
  0x2d   :  { %406 = vmatpush3.bf16.msra.mxu0 %v459_v2  ;;  %414 = vmatpush3.bf16.msra.mxu1 %v461_v6  ;;  %v475_v28 = vld [vmem:[#allocation6 + $0xb8] sm:$0xff]  }
  0x2e   :  { %431 = vmatprep.subr.bf16.mxu0 %v554_v0  ;;  %415 = vmatprep.subr.bf16.mxu1 %v554_v0  ;;  %v381_v37 = vld [vmem:[%s664_s3 + $0x2] ss:$0 sm:$0xff]  ;;  %p530_p6 = pnand %p529_p5, %p523_p2 }
  0x30   :  { %408 = vmatmul.mubr.msk.bf16.vlgmr.msra.gmra.mrb[0].mxu0 %vm70_vm1, %v48_v5 }
  0x31   :  { %447 = vmatprep.mubr.msk.bf16.mxu0 %vm555_vm0, %v554_v0  ;;  %416 = vmatpush3.bf16.msra.mxu1 %v462_v7 }
  0x32   :  { %417 = vmatprep.subr.bf16.mxu1 %v554_v0  ;;  %432 = vmatpush3.bf16.msra.mxu0 %v468_v13 }
  0x33   :  { %433 = vmatprep.subr.bf16.mxu0 %v554_v0 }
  0x35   :  { %418 = vmatpush3.bf16.msra.mxu1 %v463_v8 }
  0x36   :  { %419 = vmatprep.subr.bf16.mxu1 %v554_v0  ;;  %434 = vmatpush3.bf16.msra.mxu0 %v469_v14 }
  0x37   :  { %435 = vmatprep.subr.bf16.mxu0 %v554_v0 }
  0x39   :  { %420 = vmatpush3.bf16.msra.mxu1 %v464_v9 }
  0x3a   :  { %421 = vmatprep.subr.bf16.mxu1 %v554_v0  ;;  %436 = vmatpush3.bf16.msra.mxu0 %v470_v15 }
  0x3b   :  { %437 = vmatprep.subr.bf16.mxu0 %v554_v0 }
  0x3d   :  { %422 = vmatpush3.bf16.msra.mxu1 %v465_v10 }
  0x3e   :  { %423 = vmatprep.subr.bf16.mxu1 %v554_v0  ;;  %438 = vmatpush3.bf16.msra.mxu0 %v471_v16 }
  0x3f   :  { %439 = vmatprep.subr.bf16.mxu0 %v554_v0 }
  0x41   :  { %424 = vmatpush3.bf16.msra.mxu1 %v466_v11 }
  0x42   :  { %425 = vmatprep.subr.bf16.mxu1 %v554_v0  ;;  %440 = vmatpush3.bf16.msra.mxu0 %v472_v17 }
  0x43   :  { %441 = vmatprep.subr.bf16.mxu0 %v554_v0 }
  0x45   :  { %426 = vmatpush3.bf16.msra.mxu1 %v467_v12 }
  0x46   :  { %442 = vmatpush3.bf16.msra.mxu0 %v473_v18 }
  0x47   :  { %443 = vmatprep.subr.bf16.mxu0 %v554_v0 }
  0x4a   :  { %444 = vmatpush3.bf16.msra.mxu0 %v474_v27 }
  0x4b   :  { %445 = vmatprep.subr.bf16.mxu0 %v554_v0 }
  0x4e   :  { %446 = vmatpush3.bf16.msra.mxu0 %v475_v28 }
 0x103   :  { %v108_v20 = vpop.f32.mrb[0].mxu0 }
 0x104   :  { %v109_v21 = vadd.f32 %v360_v19, %v108_v20  ;;  %v409_v22 = vpop.f32.mrb[1].mxu0 }
 0x105   :  { %v111_v23 = vpop.f32.mrb[2].mxu0 }
 0x106   :  { %v114_v24 = vmax.f32 %v109_v21, 0.0  ;;  %v410_v25 = vpop.f32.mrb[3].mxu0 }
 0x108   :  { %v115_v26 = vpack.c.bf16 %v114_v24, %v114_v24 }
 0x10a   :  { %428 = vmatmul.mubr.bf16.vlgmr.msra.gmra.mrb[0].mxu1 %v115_v26 }
 0x1dd   :  { %v220_v30 = vpop.f32.mrb[0].mxu1 }
 0x1de   :  { %v221_v31 = vadd.f32 %v364_v29, %v220_v30  ;;  %v429_v32 = vpop.f32.mrb[1].mxu1 }
 0x1df   :  { %v223_v33 = vpop.f32.mrb[2].mxu1 }
 0x1e0   :  { %v226_v34 = vmax.f32 %v221_v31, 0.0  ;;  %v430_v35 = vpop.f32.mrb[3].mxu1 }
 0x1e2   :  { %v227_v36 = vpack.c.bf16 %v226_v34, %v226_v34 }
 0x1e4   :  { %448 = vmatmul.mubr.bf16.vlgmr.msra.gmra.mrb[4].mxu0 %v227_v36 }
 0x2b7   :  { %v327_v38 = vpop.f32.mrb[4].mxu0 }
 0x2b8   :  { %v338_v39 = vadd.f32 %v381_v37, %v327_v38  ;;  %v449_v40 = vpop.f32.mrb[5].mxu0 }
 0x2b9   :  { %v330_v41 = vpop.f32.mrb[6].mxu0 }
 0x2ba   :  { %476 = vtanh.f32 %v338_v39  ;;  %v450_v42 = vpop.f32.mrb[7].mxu0 }
 0x2c4   :  { %v477_v44 = vpop.eup %476 }
 0x2c5   :  { %v341_v45 = vmul.f32 %v477_v44, %v340_v43 }
 0x2c7   :  { %343 = vst.msk [vmem:[#allocation8] sm:$0xff] %vm342_vm2, %v341_v45 }
 0x2c8   :  { %533 = shalt.err (!%p530_p6)
}
 0x2c9   :  { %s534_s25 = scalar_lea.hbm %s665_s4, 128 }
 0x2ca   :  { %p535_p7 = scmp.ne.s32.totalorder %s665_s4, %s534_s25  ;;  %p538_p8 = scmp.lt.u32.totalorder %s534_s25, %s665_s4 }
 0x2cc   :  { %p540_p9 = pnand %p538_p8, %p535_p7 }
 0x2ce   :  { %543 = shalt.err (!%p540_p9)
}
 0x2cf   :  { %353 = dma.vmem_to_hbm [thread:$0]  %s351_s22, 128, %s665_s4, [#allocation5]  }
 0x2d0   :  { %548 = dma.done.wait [#allocation5], 128  }
 0x2d1   :  { %549 = vsyncadd [#allocation5], 4294967168 }
 0x2d2   :  { %357 = vsyncpa [#allocation4], 1 }
 0x2d3   :  { %358 = vsyncpa [#allocation7], 1 }
 0x2d4   :  { %359 = vsyncpa [#allocation5], 1 }

</bundles_post_ra>
